<compile_context>
chip_gen: v7x
topology: tpu7x:2x2x1
jax: 0.10.0
libtpu: 0.0.40
codegen_flags: <defaults>
</compile_context>

<pallas_src>
import jax
import jax.numpy as jnp
import numpy as np
from jax.experimental import pallas as pl
from jax.experimental.pallas import tpu as pltpu


def _round_up(x, m):
    return ((x + m - 1) // m) * m


# ----------------------------------------------------------------------------
# Kernels
# ----------------------------------------------------------------------------
def _conv1x1_kernel_single(x_ref, w_ref, b_ref, o_ref):
    # x_ref: (1, Ci, TS), w_ref: (Co, Ci), b_ref: (Co, TS), o_ref: (1, Co, TS)
    acc = jnp.dot(w_ref[...], x_ref[0], preferred_element_type=jnp.float32)
    o_ref[0] = (acc + b_ref[...]).astype(o_ref.dtype)


def _conv1x1_kernel_acc(x_ref, w_ref, b_ref, o_ref, acc_ref):
    # K-tiled variant: acc_ref (Co, TS) f32 persists across the K grid axis.
    k = pl.program_id(2)

    @pl.when(k == 0)
    def _():
        acc_ref[...] = jnp.zeros_like(acc_ref)

    acc_ref[...] += jnp.dot(w_ref[...], x_ref[0],
                            preferred_element_type=jnp.float32)

    @pl.when(k == pl.num_programs(2) - 1)
    def _():
        o_ref[0] = (acc_ref[...] + b_ref[...]).astype(o_ref.dtype)


# ----------------------------------------------------------------------------
# Wrapper: layout-preserving pointwise Conv3d
# ----------------------------------------------------------------------------
def pointwise_conv3d(x, w, b, *, tk_max=2048, vmem_budget=8 * 1024 * 1024):
    """x: (N, Ci, D, H, W), w: (Co, Ci), b: (Co,) -> (N, Co, D, H, W)."""
    N, Ci, D, H, W = x.shape
    Co = w.shape[0]
    S = D * H * W

    x3 = x.reshape(N, Ci, S)              # contiguous reshape: free, no copy

    # ---- reduction (input-channel) tiling ----------------------------------
    if Ci <= tk_max:
        TK, Kp = Ci, Ci                   # whole-Ci block (full dim: no pad)
        xk, wk = x3, w
    else:                                 # huge Ci: tile K, zero-pad to TK
        TK = 512
        Kp = _round_up(Ci, TK)
        xk = jnp.pad(x3, ((0, 0), (0, Kp - Ci), (0, 0)))
        wk = jnp.pad(w, ((0, 0), (0, Kp - Ci)))
    num_k = Kp // TK

    # ---- spatial (lane) tiling: largest tile within a VMEM budget ----------
    x_item = x.dtype.itemsize
    # x double-buffer + out double-buffer + f32 accumulator + bias, per column
    per_col = 2 * TK * x_item + Co * (2 * x_item + 8)
    ts_cap = (vmem_budget // per_col // 128) * 128
    ts_cap = max(512, min(ts_cap, 32768))
    TS = S if S <= ts_cap else ts_cap     # TS is the full S or a 128-multiple
    num_s = pl.cdiv(S, TS)

    # Bias pre-broadcast over the spatial tile (tiny; keeps the epilogue a
    # plain same-shape VPU add instead of an in-kernel lane broadcast).
    b_tile = jnp.broadcast_to(b.astype(jnp.float32).reshape(Co, 1), (Co, TS))

    if num_k == 1:
        kernel = _conv1x1_kernel_single
        scratch = []
    else:
        kernel = _conv1x1_kernel_acc
        scratch = [pltpu.VMEM((Co, TS), jnp.float32)]

    out = pl.pallas_call(
        kernel,
        out_shape=jax.ShapeDtypeStruct((N, Co, S), x.dtype),
        grid_spec=pltpu.PrefetchScalarGridSpec(
            num_scalar_prefetch=0,
            grid=(N, num_s, num_k),
            in_specs=[
                pl.BlockSpec((1, TK, TS), lambda n, s, k: (n, k, s)),
                pl.BlockSpec((Co, TK), lambda n, s, k: (0, k)),
                pl.BlockSpec((Co, TS), lambda n, s, k: (0, 0)),
            ],
            out_specs=pl.BlockSpec((1, Co, TS), lambda n, s, k: (n, 0, s)),
            scratch_shapes=scratch,
        ),
        compiler_params=pltpu.CompilerParams(
            dimension_semantics=("parallel", "parallel", "arbitrary")),
    )(xk, wk, b_tile)

    return out.reshape(N, Co, D, H, W)


# ----------------------------------------------------------------------------
# OutConv3d parameters + forward
# ----------------------------------------------------------------------------
def outconv3d_init(key, in_channels, out_channels):
    kw, kb = jax.random.split(key, 2)
    return {
        # PyTorch Conv3d weight layout: (Co, Ci, 1, 1, 1)
        "w": jax.random.normal(kw, (out_channels, in_channels, 1, 1, 1),
                               jnp.float32) * 0.1,
        "b": jax.random.normal(kb, (out_channels,), jnp.float32) * 0.1,
    }


def outconv3d_forward(params, x):
    """Equivalent to nn.Conv3d(Ci, Co, kernel_size=1)(x); x: (N,Ci,D,H,W)."""
    Co, Ci = params["w"].shape[:2]
    w2d = params["w"].reshape(Co, Ci)      # (Co,Ci,1,1,1) -> (Co,Ci): free
    return pointwise_conv3d(x, w2d, params["b"])


# ----------------------------------------------------------------------------
# Pure-JAX reference for a sanity check
# ----------------------------------------------------------------------------
def outconv3d_ref(params, x):
    Co, Ci = params["w"].shape[:2]
    w2d = params["w"].reshape(Co, Ci)
    out = jnp.einsum("ncdhw,oc->nodhw", x.astype(jnp.float32), w2d)
    return out + params["b"].reshape(1, Co, 1, 1, 1)


if __name__ == "__main__":
    key = jax.random.PRNGKey(0)
    k_x, k_par = jax.random.split(key, 2)

    in_channels, out_channels = 4, 2
    x = jax.random.normal(k_x, (2, in_channels, 8, 8, 8), jnp.float32)
    params = outconv3d_init(k_par, in_channels, out_channels)

    out = outconv3d_forward(params, x)
    out = jax.block_until_ready(out)
    assert out.shape == (2, out_channels, 8, 8, 8), out.shape
    assert bool(jnp.all(jnp.isfinite(out)))

    ref = jax.block_until_ready(outconv3d_ref(params, x))
    np.testing.assert_allclose(np.asarray(out), np.asarray(ref),
                               rtol=1e-2, atol=1e-2)

    print("KERNEL_OK")
</pallas_src>

<mosaic_0001>
module attributes {stable_mosaic.version = 11 : i64} {
  func.func @_conv1x1_kernel_single(%arg0: i32, %arg1: i32, %arg2: i32, %arg3: memref<1x4x512xf32, #tpu.memory_space<vmem>>, %arg4: memref<2x4xf32, #tpu.memory_space<vmem>>, %arg5: memref<2x512xf32, #tpu.memory_space<vmem>>, %arg6: memref<1x2x512xf32, #tpu.memory_space<vmem>>) attributes {dimension_semantics = [#tpu.dimension_semantics<parallel>, #tpu.dimension_semantics<parallel>, #tpu.dimension_semantics<arbitrary>], iteration_bounds = array<i64: 2, 1, 1>, scalar_prefetch = 0 : i64, scratch_operands = 0 : i64, tpu.core_type = #tpu.core_type<tc>, window_params = [{transform_indices = @transform_0, window_bounds = array<i64: 1, 4, 512>}, {transform_indices = @transform_1, window_bounds = array<i64: 2, 4>}, {pipeline_mode = #tpu.pipeline_mode<synchronous>, transform_indices = @transform_2, window_bounds = array<i64: 2, 512>}, {transform_indices = @transform_3, window_bounds = array<i64: 1, 2, 512>}]} {
    %c0 = arith.constant 0 : index
    %c0_0 = arith.constant 0 : index
    %0 = vector.load %arg4[%c0, %c0_0] : memref<2x4xf32, #tpu.memory_space<vmem>>, vector<2x4xf32>
    %c0_1 = arith.constant 0 : index
    %c0_2 = arith.constant 0 : index
    %c0_3 = arith.constant 0 : index
    %1 = vector.load %arg3[%c0_1, %c0_2, %c0_3] : memref<1x4x512xf32, #tpu.memory_space<vmem>>, vector<1x4x512xf32>
    %2 = vector.shape_cast %1 : vector<1x4x512xf32> to vector<4x512xf32>
    %cst = arith.constant dense<0.000000e+00> : vector<2x512xf32>
    %3 = tpu.matmul %0, %2, %cst {dimension_numbers = #tpu.dot_dimension_numbers<[1], [0], [0], [1], [0, 0, 1, 1], [], []>} : vector<2x4xf32>, vector<4x512xf32>, vector<2x512xf32> -> vector<2x512xf32>
    %c0_4 = arith.constant 0 : index
    %c0_5 = arith.constant 0 : index
    %4 = vector.load %arg5[%c0_4, %c0_5] : memref<2x512xf32, #tpu.memory_space<vmem>>, vector<2x512xf32>
    %5 = arith.addf %3, %4 : vector<2x512xf32>
    %c0_6 = arith.constant 0 : index
    %c0_7 = arith.constant 0 : index
    %c0_8 = arith.constant 0 : index
    %6 = vector.load %arg6[%c0_6, %c0_7, %c0_8] : memref<1x2x512xf32, #tpu.memory_space<vmem>>, vector<1x2x512xf32>
    %7 = vector.shape_cast %6 : vector<1x2x512xf32> to vector<2x512xf32>
    %8 = vector.shape_cast %5 : vector<2x512xf32> to vector<1x2x512xf32>
    tpu.vector_store %arg6[%c0_6, %c0_7, %c0_8], %8 {strides = array<i32>} : memref<1x2x512xf32, #tpu.memory_space<vmem>>, vector<1x2x512xf32>,
    return
  }
  func.func @transform_0(%arg0: i32, %arg1: i32, %arg2: i32) -> (i32, i32, i32) {
    %c0_i32 = arith.constant 0 : i32
    return %arg0, %arg2, %arg1 : i32, i32, i32
  }
  func.func @transform_1(%arg0: i32, %arg1: i32, %arg2: i32) -> (i32, i32) {
    %c0_i32 = arith.constant 0 : i32
    %c0_i32_0 = arith.constant 0 : i32
    return %c0_i32, %arg2 : i32, i32
  }
  func.func @transform_2(%arg0: i32, %arg1: i32, %arg2: i32) -> (i32, i32) {
    %c0_i32 = arith.constant 0 : i32
    %c0_i32_0 = arith.constant 0 : i32
    %c0_i32_1 = arith.constant 0 : i32
    return %c0_i32, %c0_i32_0 : i32, i32
  }
  func.func @transform_3(%arg0: i32, %arg1: i32, %arg2: i32) -> (i32, i32, i32) {
    %c0_i32 = arith.constant 0 : i32
    %c0_i32_0 = arith.constant 0 : i32
    return %arg0, %c0_i32, %arg1 : i32, i32, i32
  }
}

</mosaic_0001>

<bundles_post_ra>
// kernel: tpu_custom_call.1
= control target key start
LH: loop header
LB: loop body
LE: loop exit
PB: predicated region body
PF: predicated region fallthrough
CT: control target
= control target key end

     0   :  { %8 = vsyncpa [#allocation3], 0  ;;  %s1082_s0 = inlined_call_operand.hbm [shape: f32[2,4,512], index: 0, kind: input, shape index: {}]   ;;  %s1083_s1 = inlined_call_operand.vmem [shape: f32[2,4], index: 1, kind: input, shape index: {}]   ;;  %s1084_s2 = inlined_call_operand.hbm [shape: f32[2,512], index: 2, kind: input, shape index: {}]   ;;  %s1085_s3 = inlined_call_operand.hbm [shape: f32[2,2,512], index: 3, kind: output, shape index: {}]  }
   0x1   :  { %10 = vsyncpa [#allocation3 + $0x1], 0 }
   0x2   :  { %11 = vsyncpa [#allocation6], 0 }
   0x3   :  { %12 = vsyncpa [#allocation4], 0 }
   0x4   :  { %14 = vsyncpa [#allocation4 + $0x1], 0  ;;  %s862_s12 = smov 0   ;;  %s864_s13 = smov 0  }
   0x5   :  { %s866_s14 = smov 0   ;;  %s868_s15 = smov 0  }
   0x6   :  { %s870_s16 = smov 0   ;;  %s872_s17 = smov 0  }
   0x7 LB: > { %s587_s18 = sadd.s32 4294967295, %s835_s17   ;;  %s588_s19 = sadd.s32 4294967294, %s835_s17   ;;  %s835_s17 = sphi %s872_s17, %s20_s17   ;;  %s831_s16 = sphi %s870_s16, %s1110_s16   ;;  %s827_s15 = sphi %s868_s15, %s1109_s15   ;;  %s823_s14 = sphi %s866_s14, %s1108_s14   ;;  %s819_s13 = sphi %s864_s13, %s1107_s13   ;;  %s815_s12 = sphi %s862_s12, %s1106_s12  }
   0x8   : > { %p63_p0 = scmp.ne.s32.totalorder %s819_s13, %s815_s12  ;;  %p896_p1 = scmp.eq.s32.totalorder %s587_s18, 0 }
   0x9   : > { %p900_p2 = scmp.eq.s32.totalorder %s587_s18, 1  ;;  %p142_p3 = scmp.eq.s32.totalorder %s588_s19, 1 }
   0xa   : > { %s1090_s20 = scalar_select %p896_p1, 1, 0 }
   0xb   : > { %s1091_s21 = scalar_select %p900_p2, 1, 0 }
   0xc   : > { %p906_p4 = por %p896_p1, %p63_p0  ;;  %p589_p5 = scmp.ge.s32.totalorder %s835_s17, 1 }
   0xd   : > { %p911_p6 = por %p142_p3, %p63_p0  ;;  %p149_p7 = scmp.lt.s32.totalorder %s835_s17, 3 }
   0xe   : > { %s1092_s22 = scalar_select %p906_p4, 1, 0 }
   0xf   : > { %s1093_s23 = scalar_select %p911_p6, 1, 0 }
  0x10   : > { %p916_p8 = pnand %p589_p5, %p149_p7  ;;  %s837_s25 = smov [#allocation5]  }
  0x11   : > { %s169_s26 = sshll.u32 %s837_s25, 4  ;;  %s39_s28 = sadd.s32 1, %s831_s16  ;;  %s170_s26 = int_to_ptr.vmem [resolvable:$true] %s169_s26 }
  0x12   : > { %s1094_s24 = scalar_select %p916_p8, 1, 0 }
  0x13   : > { %p621_p10 = pneg %p916_p8  ;;  %s50_s29 = sadd.s32 1, %s823_s14 }
  0x14   : > { %p931_p12 = scmp.ge.s32.totalorder %s39_s28, 2  ;;  %s691_s6 = scalar_lea.hbm %s1084_s2, 128 }
  0x15   : > { %p925_p11 = pnand %p621_p10, %p896_p1  ;;  %p692_p13 = scmp.ne.s32.totalorder %s1084_s2, %s691_s6 }
  0x16   : > { %s1096_s30 = scalar_select %p931_p12, 1, 0 }
  0x17   : > { %p693_p0 = pneg %p925_p11  ;;  %p698_p7 = scmp.lt.u32.totalorder %s691_s6, %s1084_s2 }
  0x19   : > { %p694_p3 = pnand %p693_p0, %p692_p13 }
  0x1b   : > { %p695_p5 = pneg %p694_p3 }
  0x1d   : > { %p700_p10 = pnand %p698_p7, %p695_p5 }
  0x1f   : > { %703 = shalt.err (!%p700_p10)
}
  0x20   : > { %s704_s11 = scalar_lea.vmem %s170_s26, 128  ;;  %p712_p4 = scmp.lt.s32.totalorder %s170_s26, %s170_s26 }
  0x21   : > { %p705_p9 = scmp.ne.s32.totalorder %s170_s26, %s704_s11  ;;  %p713_p8 = scmp.lt.s32.totalorder %s704_s11, %s704_s11 }
  0x23   : > { %p707_p6 = pnand %p705_p9, %p693_p0  ;;  %p714_p2 = por %p713_p8, %p712_p4 }
  0x25   : > { %p708_p1 = pneg %p707_p6 }
  0x27   : > { %p715_p12 = pnand %p714_p2, %p708_p1 }
  0x29   : > { %718 = shalt.err (!%p715_p12)
}
  0x2a   : > { %624 = dma.hbm_to_vmem [thread:$0]  (!%p925_p11), %s1084_s2, 128, %s170_s26, [#allocation6]  }
  0x2b   : > { %p1097_p4 = scmp.ne.s32.totalorder %s1096_s30, 0  ;;  %p57_p1 = scmp.ne.s32.totalorder %s823_s14, %s819_s13 }
  0x2c   : > { %p58_p2 = scmp.eq.s32.totalorder %s835_s17, 0  ;;  %p634_p6 = scmp.lt.s32.totalorder %s835_s17, 2 }
  0x2d   : > { %s1112_s28 = smov (%p1097_p4, %s39_s28), 0  ;;  %p1098_p12 = scmp.ne.s32.totalorder %s1091_s21, 0 }
  0x2e   : > { %s43_s25 = ssub.s32 %s831_s16, %s1112_s28  ;;  %p59_p9 = por %p58_p2, %p57_p1 }
  0x2f   : > { %p48_p8 = scmp.eq.s32.totalorder %s43_s25, 0  ;;  %p963_p13 = por %p1098_p12, %p57_p1 }
  0x30   : > { %s180_s4 = sand.u32 1, %s823_s14   ;;  %s611_s30 = sshll.u32 %s831_s16, 8 }
  0x31   : > { %s971_s5 = scalar_select %p48_p8, %s823_s14, %s50_s29  }
  0x32   : > { %s593_s26 = sshll.u32 %s180_s4, 4  ;;  %s977_s8 = scalar_lea.hbm %s1082_s0, %s611_s30 }
  0x33   : > { %s184_s21 = scalar_lea.vmem [#allocation2], %s593_s26  ;;  %p981_p11 = pnand %p634_p6, %p59_p9 }
  0x34   : > { %s196_s9 = sshll.u32 %s184_s21, 4  ;;  %s181_s29 = scalar_lea.sflag [#allocation3], %s180_s4  ;;  %s979_s9 = int_to_ptr.vmem [resolvable:$true] %s196_s9 }
  0x35   : > { %s719_s11 = scalar_lea.hbm %s977_s8, 256  ;;  %p721_p3 = pneg %p981_p11 }
  0x36   : > { %p720_p0 = scmp.ne.s32.totalorder %s977_s8, %s719_s11  ;;  %s724_s25 = scalar_lea.hbm %s1082_s0, 512 }
  0x37   : > { %p725_p10 = scmp.lt.u32.totalorder %s977_s8, %s1082_s0  ;;  %p726_p4 = scmp.lt.u32.totalorder %s724_s25, %s719_s11 }
  0x38   : > { %p722_p5 = pnand %p721_p3, %p720_p0  ;;  %p728_p2 = scmp.lt.u32.totalorder %s719_s11, %s977_s8 }
  0x39   : > { %p727_p1 = por %p726_p4, %p725_p10 }
  0x3a   : > { %p723_p7 = pneg %p722_p5 }
  0x3b   : > { %p729_p6 = por %p728_p2, %p727_p1 }
  0x3d   : > { %p730_p8 = pnand %p729_p6, %p723_p7 }
  0x3f   : > { %733 = shalt.err (!%p730_p8)
}
  0x40   : > { %s734_s4 = scalar_lea.vmem %s979_s9, 256  ;;  %s838_s6 = smov [#allocation2]  }
  0x41   : > { %p735_p9 = scmp.ne.s32.totalorder %s979_s9, %s734_s4  ;;  %s739_s7 = sshll.u32 %s838_s6, 4  ;;  %s740_s7 = int_to_ptr.vmem [resolvable:$false] %s739_s7 }
  0x42   : > { %s741_s21 = scalar_lea.vmem %s740_s7, 512  ;;  %p742_p5 = scmp.lt.s32.totalorder %s979_s9, %s740_s7 }
  0x43   : > { %p737_p12 = pnand %p735_p9, %p721_p3  ;;  %p743_p10 = scmp.lt.s32.totalorder %s741_s21, %s734_s4 }
  0x45   : > { %p738_p0 = pneg %p737_p12  ;;  %p744_p4 = por %p743_p10, %p742_p5 }
  0x47   : > { %p745_p1 = pnand %p744_p4, %p738_p0 }
  0x49   : > { %748 = shalt.err (!%p745_p1)
}
  0x4a   : > { %628 = dma.hbm_to_vmem [thread:$0]  (!%p981_p11), %s977_s8, 256, %s979_s9, %s181_s29  }
  0x4b   : > { %p1101_p7 = scmp.ne.s32.totalorder %s1094_s24, 0 }
  0x4c   : > { %s1013_s11 = sand.u32 (!%p1101_p7), 1, %s819_s13   ;;  %p1102_p3 = scmp.ne.s32.totalorder (!%p1101_p7), %s1092_s22, 0 }
  0x4d   : > { %205 = sbr.rel (%p1101_p7) target bundleno = 328 (0x148), region = 32  ;;  %s597_s18 = sshll.u32 (!%p1101_p7), %s1013_s11, 4 }
  0x4e   : > { %s208_s19 = scalar_lea.sflag (!%p1101_p7), [#allocation3], %s1013_s11  ;;  %s211_s25 = scalar_lea.vmem (!%p1101_p7), [#allocation2], %s597_s18 }
  0x54   : > { %802 = dma.done.wait (%p1102_p3), %s208_s19, 256  }
  0x55   : > { %804 = vsyncadd (%p1102_p3), %s208_s19, 4294967040  ;;  %p1103_p2 = scmp.ne.s32.totalorder %s1090_s20, 0 }
  0x57   : > { %806 = dma.done.wait (%p1103_p2), [#allocation6], 128  }
  0x58   : > { %808 = vsyncadd (%p1103_p2), [#allocation6], 4294967168  ;;  %v839_v0 = vmov 0.0   ;;  %v249_v1 = vld [vmem:[%s211_s25] sm:$0xff]  ;;  %vm282_vm0 = vcmask 1043456   ;;  %v250_v2 = vld [vmem:[%s211_s25 + $0x8] sm:$0xff]  ;;  %v261_v8 = vlaneseq }
  0x59   : > { %355 = vmatprep.mubr.f32.mxu0 %v839_v0  ;;  %426 = vmatprep.mubr.f32.mxu1 %v839_v0  ;;  %v254_v3 = vcombine.high %v249_v1, %v249_v1  ;;  %v255_v4 = vcombine.high %v250_v2, %v250_v2  ;;  %v248_v5 = vld [vmem:[%s1083_s1] sm:$0x3]  ;;  %vm278_vm1 = vcmask 31744   ;;  %v840_v6 = vmov 1983009808   ;;  %s599_s20 = sshll.u32 %s1013_s11, 3 }
  0x5a   : > { %v259_v7 = vunpack.c.l.s4 %v840_v6  ;;  %v262_v10 = vshrl.u32 %v261_v8, 7  ;;  %v251_v11 = vld [vmem:[#allocation5] sm:$0xff]  ;;  %s612_s22 = sshll.u32 %s827_s15, 7  ;;  %s241_s9 = scalar_lea.vmem [#allocation7], %s599_s20 }
  0x5b   : > { %600 = vmatprep.subr.msk.mxu0 %vm282_vm0, %v254_v3  ;;  %603 = vmatprep.subr.msk.mxu1 %vm282_vm0, %v255_v4  ;;  %v257_v13 = vcombine.high %v251_v11, %v251_v11  ;;  %s473_s10 = sshll.u32 %s241_s9, 4  ;;  %s1033_s30 = scalar_lea.hbm %s1085_s3, %s612_s22  ;;  %s1035_s10 = int_to_ptr.vmem [resolvable:$true] %s473_s10 }
  0x5c   : > { %601 = vmatpush1.msk.msra.mxu0 %vm282_vm0, %v249_v1  ;;  %604 = vmatpush1.msk.msra.mxu1 %vm282_vm0, %v250_v2  ;;  %v260_v9 = vunpack.c.0.s8 %v259_v7  ;;  %s457_s4 = scalar_lea.sflag [#allocation4], %s1013_s11  ;;  %s749_s6 = scalar_lea.vmem %s1035_s10, 128 }
  0x5d   : > { %602 = vmatmul.mubr.msk.f32.vlgmr.msra.gmra.mrb[0].mxu0 %vm278_vm1, %v248_v5  ;;  %605 = vmatmul.mubr.msk.f32.vlgmr.msra.gmra.mrb[0].mxu1 %vm278_vm1, %v248_v5  ;;  %p750_p11 = scmp.ne.s32.totalorder %s1035_s10, %s749_s6  ;;  %s841_s15 = smov [#allocation7]  }
  0x5e   : > { %v263_v12 = vsub.s32 %v260_v9, %v262_v10  ;;  %s753_s7 = sshll.u32 %s841_s15, 4  ;;  %s754_s7 = int_to_ptr.vmem [resolvable:$false] %s753_s7 }
  0x5f   : > { %p751_p6 = pnand %p750_p11, %p963_p13  ;;  %s755_s21 = scalar_lea.vmem %s754_s7, 256 }
  0x60   : > { %v264_v14 = vrot.slane %v251_v11, %v263_v12  ;;  %v271_v15 = vrot.slane %v257_v13, %v263_v12  ;;  %p756_p9 = scmp.lt.s32.totalorder %s1035_s10, %s754_s7  ;;  %p757_p12 = scmp.lt.s32.totalorder %s755_s21, %s749_s6 }
  0x61   : > { %p752_p8 = pneg %p751_p6 }
  0x62   : > { %v272_v16 = vcombine.high %v264_v14, %v264_v14  ;;  %v273_v17 = vcombine.high %v271_v15, %v271_v15  ;;  %p758_p0 = por %p757_p12, %p756_p9 }
  0x64   : > { %p759_p5 = pnand %p758_p0, %p752_p8 }
 0x130   : > { %v357_v18 = vpop.f32.mrb[0].mxu0  ;;  %v428_v19 = vpop.f32.mrb[0].mxu1 }
 0x131   : > { %v358_v20 = vadd.f32 %v357_v18, %v264_v14  ;;  %v429_v21 = vadd.f32 %v428_v19, %v271_v15  ;;  %v359_v22 = vpop.f32.mrb[1].mxu0  ;;  %v430_v23 = vpop.f32.mrb[1].mxu1 }
 0x132   : > { %v360_v24 = vadd.f32 %v359_v22, %v272_v16  ;;  %v431_v25 = vadd.f32 %v430_v23, %v273_v17 }
 0x134   : > { %v437_v26 = vcombine.low %v358_v20, %v360_v24  ;;  %v438_v27 = vcombine.low %v429_v21, %v431_v25 }
 0x136   : > { %v445_v28 = vrot.slane %v437_v26, %v263_v12  ;;  %v452_v29 = vrot.slane %v438_v27, %v263_v12 }
 0x138   : > { %v453_v30 = vcombine.low %v445_v28, %v452_v29 }
 0x13a   : > { %455 = vst [vmem:[%s241_s9] sm:$0xff] %v453_v30 }
 0x13b   : > { %762 = shalt.err (!%p759_p5)
}
 0x13c   : > { %s763_s11 = scalar_lea.hbm %s1033_s30, 128  ;;  %s767_s25 = scalar_lea.hbm %s1085_s3, 256 }
 0x13d   : > { %p764_p10 = scmp.ne.s32.totalorder %s1033_s30, %s763_s11  ;;  %p768_p7 = scmp.lt.u32.totalorder %s1033_s30, %s1085_s3 }
 0x13e   : > { %p769_p3 = scmp.lt.u32.totalorder %s767_s25, %s763_s11  ;;  %p771_p11 = scmp.lt.u32.totalorder %s763_s11, %s1033_s30 }
 0x13f   : > { %p765_p4 = pnand %p764_p10, %p963_p13 }
 0x140   : > { %p770_p2 = por %p769_p3, %p768_p7 }
 0x141   : > { %p766_p1 = pneg %p765_p4 }
 0x142   : > { %p772_p6 = por %p771_p11, %p770_p2 }
 0x144   : > { %p773_p8 = pnand %p772_p6, %p766_p1 }
 0x146   : > { %776 = shalt.err (!%p773_p8)
}
 0x147   : > { %619 = dma.vmem_to_hbm [thread:$0]  (%p963_p13), %s1035_s10, 128, %s1033_s30, %s457_s4  }
 0x148 PF: > { %s485_s20 = sand.u32 1, %s815_s12   ;;  %p1104_p9 = scmp.ne.s32.totalorder %s1093_s23, 0 }
 0x149   : > { %p1105_p12 = scmp.ge.s32.totalorder %s835_s17, 2  ;;  %s486_s22 = scalar_lea.sflag [#allocation4], %s485_s20 }
 0x14b   : > { %p630_p0 = pnand %p1105_p12, %p1104_p9 }
 0x14d   : > { %810 = dma.done.wait (!%p630_p0), %s486_s22, 128  }
 0x14e   : > { %812 = vsyncadd (!%p630_p0), %s486_s22, 4294967168  ;;  %s20_s17 = sadd.s32 1, %s835_s17   ;;  %s1106_s12 = smov %s819_s13 }
 0x14f   : > { %p17_p5 = scmp.ge.s32.totalorder %s20_s17, 4   ;;  %s1107_s13 = smov %s823_s14 }
 0x150   : > { %s1108_s14 = smov %s971_s5  ;;  %s1109_s15 = smov %s831_s16 }
 0x151   : > { %s1110_s16 = smov %s1112_s28  ;;  %19 = sbr.rel (!%p17_p5) target bundleno = 7 (0x7), region = 84 }
 0x158   :  { %491 = vsyncpa [#allocation3], 1 }
 0x159   :  { %493 = vsyncpa [#allocation3 + $0x1], 1 }
 0x15a   :  { %494 = vsyncpa [#allocation6], 1 }
 0x15b   :  { %495 = vsyncpa [#allocation4], 1 }
 0x15c   :  { %497 = vsyncpa [#allocation4 + $0x1], 1 }

</bundles_post_ra>
